<compile_context>
chip_gen: v7x
topology: tpu7x:2x2x1
jax: 0.10.0
libtpu: 0.0.40
codegen_flags: <defaults>
</compile_context>

<pallas_src>
import functools

import jax
import jax.numpy as jnp
from jax.experimental import pallas as pl
from jax.experimental.pallas import tpu as pltpu


def _vmem_capacity_bytes():
    """Generation-aware VMEM capacity (falls back to the v7x per-TC 64 MiB)."""
    try:
        info = pltpu.get_tpu_info()
        cap = getattr(info, "vmem_capacity_bytes", None)
        if cap:
            return int(cap)
    except Exception:
        pass
    return 64 * 2 ** 20


# --------------------------- rows path (L < 128) ---------------------------
# x has been relayouted ONCE in the wrapper to (B*L, d_model) in compute dtype.

def _rows_kernel(x_ref, w1_ref, b1_ref, w2_ref, b2_ref, wh_ref, bh_ref,
                 out_ref, *, seq_len):
    b_blk = out_ref.shape[0]

    # conv1 (1x1) + relu: (b_blk*L, d) @ (d, 256), f32 accumulation
    h1 = jnp.dot(x_ref[...], w1_ref[...], preferred_element_type=jnp.float32)
    h1 = jnp.maximum(h1 + b1_ref[...], 0.0).astype(w2_ref.dtype)

    # conv2 (1x1) + relu: (b_blk*L, 256) @ (256, 128)
    h2 = jnp.dot(h1, w2_ref[...], preferred_element_type=jnp.float32)
    h2 = jnp.maximum(h2 + b2_ref[...], 0.0)

    # AdaptiveMaxPool1d(1): per-batch max over the L rows -> (b_blk, 128)
    pooled = jnp.max(h2.reshape(b_blk, seq_len, h2.shape[-1]), axis=1)

    # fused bbox_pred + class_score head (lane-dense, zero-padded)
    out = jnp.dot(pooled.astype(wh_ref.dtype), wh_ref[...],
                  preferred_element_type=jnp.float32) + bh_ref[...]
    out_ref[:, 0, :] = out


# ---------------------- NCL path (L >= 128, streaming) ----------------------
# x block is (1, d_model, l_blk); L is a grid reduction axis with a running
# max accumulator, so h1/h2 live sets are bounded by l_blk columns.

def _ncl_kernel(x_ref, w1_ref, b1_ref, w2_ref, b2_ref, wh_ref, bh_ref,
                out_ref, pool_acc, *, seq_len, l_blk):
    j = pl.program_id(1)

    @pl.when(j == 0)
    def _():
        # post-ReLU values are >= 0, so 0 is a valid identity for the max.
        pool_acc[...] = jnp.zeros_like(pool_acc)

    x = x_ref[0].astype(w1_ref.dtype)                     # (d_model, l_blk)

    # conv1 + relu in NCL orientation: (256, d) @ (d, l_blk) -> (256, l_blk)
    h1 = jnp.dot(w1_ref[...], x, preferred_element_type=jnp.float32)
    h1 = jnp.maximum(h1 + b1_ref[...], 0.0).astype(w2_ref.dtype)

    # conv2 + relu: (128, 256) @ (256, l_blk) -> (128, l_blk)
    h2 = jnp.dot(w2_ref[...], h1, preferred_element_type=jnp.float32)
    h2 = jnp.maximum(h2 + b2_ref[...], 0.0)

    if seq_len % l_blk != 0:
        # mask garbage lanes of the partial last L block (0 is safe: h2 >= 0)
        valid = seq_len - j * l_blk
        lane = jax.lax.broadcasted_iota(jnp.int32, h2.shape, 1)
        h2 = jnp.where(lane < valid, h2, 0.0)

    # running max over L (lane reduce) -> (128, 1)
    pool_acc[...] = jnp.maximum(pool_acc[...],
                                jnp.max(h2, axis=1, keepdims=True))

    @pl.when(j == pl.num_programs(1) - 1)
    def _():
        pooled = jnp.transpose(pool_acc[...], (1, 0)).astype(wh_ref.dtype)
        out = jnp.dot(pooled, wh_ref[...],
                      preferred_element_type=jnp.float32) + bh_ref[...]
        out_ref[0] = out                                   # (1, head_pad)


# --------------------------------- wrapper ---------------------------------

def object_detection_head(x_ncl, params, num_proposals, num_classes, *,
                          compute_dtype=jnp.bfloat16,
                          block_rows=512, l_block=2048):
    """x_ncl: (B, d_model, L) float32 — PyTorch Conv1d layout.

    Returns (bbox (B, P, 4), scores (B, P, C)), both float32."""
    w1, b1, w2, b2, wb, bb, wc, bc = params
    B, d_model, L = x_ncl.shape
    P, C = num_proposals, num_classes
    c1 = w1.shape[0]      # 256
    c2 = w2.shape[0]      # 128
    cdB = jnp.dtype(compute_dtype).itemsize

    n_head = P * 4 + P * C
    head_pad = ((n_head + 127) // 128) * 128       # lane-dense output width

    # fused, zero-padded head: (128, head_pad) weight + (1, head_pad) bias
    wh = jnp.concatenate([wb.T, wc.T], axis=1)
    bh = jnp.concatenate([bb, bc], axis=0)
    if head_pad > n_head:
        wh = jnp.pad(wh, ((0, 0), (0, head_pad - n_head)))
        bh = jnp.pad(bh, (0, head_pad - n_head))
    wh = wh.astype(compute_dtype)
    bh = bh.reshape(1, head_pad).astype(jnp.float32)

    # ---- VMEM byte budget (generation-aware) ----
    vmem_cap = _vmem_capacity_bytes()
    vmem_limit = int(min(int(vmem_cap * 0.75), 96 * 2 ** 20))
    weight_bytes = 2 * ((d_model * c1 + c1 * c2 + c2 * head_pad) * cdB
                        + (c1 + c2 + head_pad) * 4)
    budget = max(2 * 2 ** 20, int(vmem_limit * 0.6) - weight_bytes)

    flops = int(2 * B * L * (d_model * c1 + c1 * c2) + 2 * B * c2 * head_pad)
    bytes_accessed = int(B * L * d_model * 4
                         + (d_model * c1 + c1 * c2 + c2 * head_pad) * cdB
                         + (c1 + c2 + head_pad) * 4 + B * head_pad * 4)
    cost = pl.CostEstimate(flops=flops, transcendentals=0,
                           bytes_accessed=bytes_accessed)

    use_rows = (L < 128) and (L % 8 == 0)

    if use_rows:
        # one wrapper-side relayout (+ cast) of the small-L activation
        x_rows = jnp.transpose(x_ncl, (0, 2, 1)).reshape(B * L, d_model)
        x_rows = x_rows.astype(compute_dtype)
        w1t = w1.T.astype(compute_dtype)
        w2t = w2.T.astype(compute_dtype)
        b1r = b1.reshape(1, c1).astype(jnp.float32)
        b2r = b2.reshape(1, c2).astype(jnp.float32)

        # rows per grid step from the byte budget (double-buffered x + h1 + h2)
        per_row = 2 * d_model * cdB + c1 * (4 + cdB) + c2 * 4
        rows_cap = max(L, budget // per_row)
        b_blk = max(1, min(block_rows, rows_cap) // L)
        if B >= 2:
            b_blk = min(b_blk, (B + 1) // 2)   # >=2 grid steps (v7x: 2 TCs)
        b_blk = min(b_blk, B)
        grid = (pl.cdiv(B, b_blk),)

        kernel = functools.partial(_rows_kernel, seq_len=L)
        full = lambda a: pl.BlockSpec(a.shape, lambda *_, n=a.ndim: (0,) * n)

        out = pl.pallas_call(
            kernel,
            out_shape=jax.ShapeDtypeStruct((B, 1, head_pad), jnp.float32),
            grid_spec=pltpu.PrefetchScalarGridSpec(
                num_scalar_prefetch=0, grid=grid,
                in_specs=[pl.BlockSpec((b_blk * L, d_model), lambda i: (i, 0)),
                          full(w1t), full(b1r), full(w2t), full(b2r),
                          full(wh), full(bh)],
                out_specs=pl.BlockSpec((b_blk, 1, head_pad),
                                       lambda i: (i, 0, 0))),
            compiler_params=pltpu.CompilerParams(
                dimension_semantics=("parallel",),
                vmem_limit_bytes=vmem_limit),
            cost_estimate=cost,
        )(x_rows, w1t, b1r, w2t, b2r, wh, bh)
    else:
        # NCL path: weights kept in original (Cout, Cin) layout, no transpose
        w1c = w1.astype(compute_dtype)
        w2c = w2.astype(compute_dtype)
        b1c = b1.reshape(c1, 1).astype(jnp.float32)
        b2c = b2.reshape(c2, 1).astype(jnp.float32)

        per_lane = 2 * d_model * 4 + d_model * cdB + c1 * (4 + cdB) + c2 * 4
        lane_cap = max(128, (budget // per_lane) // 128 * 128)
        if L <= max(l_block, 128) and L <= lane_cap:
            l_blk = L                                  # full dim: any L allowed
        else:
            l_blk = max(128, (min(l_block, lane_cap) // 128) * 128)
            l_blk = min(l_blk, L)
        grid = (B, pl.cdiv(L, l_blk))

        kernel = functools.partial(_ncl_kernel, seq_len=L, l_blk=l_blk)
        full = lambda a: pl.BlockSpec(a.shape, lambda *_, n=a.ndim: (0,) * n)

        out = pl.pallas_call(
            kernel,
            out_shape=jax.ShapeDtypeStruct((B, 1, head_pad), jnp.float32),
            grid_spec=pltpu.PrefetchScalarGridSpec(
                num_scalar_prefetch=0, grid=grid,
                in_specs=[pl.BlockSpec((1, d_model, l_blk),
                                       lambda b, j: (b, 0, j)),
                          full(w1c), full(b1c), full(w2c), full(b2c),
                          full(wh), full(bh)],
                out_specs=pl.BlockSpec((1, 1, head_pad),
                                       lambda b, j: (b, 0, 0)),
                scratch_shapes=[pltpu.VMEM((c2, 1), jnp.float32)]),
            compiler_params=pltpu.CompilerParams(
                dimension_semantics=("parallel", "arbitrary"),
                vmem_limit_bytes=vmem_limit),
            cost_estimate=cost,
        )(x_ncl, w1c, b1c, w2c, b2c, wh, bh)

    out2 = out.reshape(B, head_pad)
    bbox = out2[:, :P * 4].reshape(B, P, 4)
    scores = out2[:, P * 4:n_head].reshape(B, P, C)
    return bbox, scores


# --------------------------- reference & params -----------------------------

def init_params(key, d_model, num_proposals, num_classes):
    """Deterministic synthetic parameters matching nn.Conv1d(k=1) shapes."""
    ks = jax.random.split(key, 8)
    def init_w(k, cout, cin):
        bound = 1.0 / jnp.sqrt(cin)
        return jax.random.uniform(k, (cout, cin), jnp.float32, -bound, bound)
    def init_b(k, cout, cin):
        bound = 1.0 / jnp.sqrt(cin)
        return jax.random.uniform(k, (cout,), jnp.float32, -bound, bound)
    w1 = init_w(ks[0], 256, d_model);            b1 = init_b(ks[1], 256, d_model)
    w2 = init_w(ks[2], 128, 256);                b2 = init_b(ks[3], 128, 256)
    wb = init_w(ks[4], num_proposals * 4, 128);  bb = init_b(ks[5], num_proposals * 4, 128)
    wc = init_w(ks[6], num_proposals * num_classes, 128)
    bc = init_b(ks[7], num_proposals * num_classes, 128)
    return (w1, b1, w2, b2, wb, bb, wc, bc)


def reference_forward(x_ncl, params, num_proposals, num_classes):
    """Pure-JAX reference mirroring the PyTorch module (f32 everywhere)."""
    w1, b1, w2, b2, wb, bb, wc, bc = params
    B = x_ncl.shape[0]
    h1 = jax.nn.relu(jnp.einsum('bcl,oc->bol', x_ncl, w1) + b1[None, :, None])
    h2 = jax.nn.relu(jnp.einsum('bcl,oc->bol', h1, w2) + b2[None, :, None])
    p = jnp.max(h2, axis=-1, keepdims=True)                     # (B, 128, 1)
    bbox = (jnp.einsum('bcl,oc->bol', p, wb) + bb[None, :, None]).reshape(
        B, num_proposals, 4)
    scores = (jnp.einsum('bcl,oc->bol', p, wc) + bc[None, :, None]).reshape(
        B, num_proposals, num_classes)
    return bbox, scores


if __name__ == "__main__":
    def run_case(case_id, B, d_model, L, P, C, l_block=2048):
        kx, kp = jax.random.split(jax.random.fold_in(jax.random.PRNGKey(0),
                                                     case_id))
        x = jax.random.normal(kx, (B, d_model, L), jnp.float32)
        params = init_params(kp, d_model, P, C)
        bbox_ref, scores_ref = reference_forward(x, params, P, C)

        # f32 compute path: bit-accurate check against the pure-JAX reference.
        bbox, scores = object_detection_head(x, params, P, C,
                                             compute_dtype=jnp.float32,
                                             l_block=l_block)
        jax.block_until_ready((bbox, scores))
        assert bbox.shape == (B, P, 4)
        assert scores.shape == (B, P, C)
        assert jnp.allclose(bbox, bbox_ref, atol=1e-4, rtol=1e-4)
        assert jnp.allclose(scores, scores_ref, atol=1e-4, rtol=1e-4)

        # default bf16 compute path (MXU fast path): loose tolerance check.
        bbox16, scores16 = object_detection_head(x, params, P, C,
                                                 l_block=l_block)
        jax.block_until_ready((bbox16, scores16))
        assert jnp.allclose(bbox16, bbox_ref, atol=2e-1, rtol=2e-1)
        assert jnp.allclose(scores16, scores_ref, atol=2e-1, rtol=2e-1)

    # rows path (L < 128): wrapper-side relayout, batch folded into M
    run_case(0, B=2, d_model=32, L=16, P=8, C=4)
    # rows path with B % b_blk != 0 (partial last batch block, masked writeback)
    run_case(1, B=3, d_model=32, L=16, P=8, C=4)
    # NCL path: L tiled on an "arbitrary" axis with running-max + lane mask
    run_case(2, B=2, d_model=32, L=320, P=8, C=4, l_block=128)

    print("KERNEL_OK")
</pallas_src>

<mosaic_0001>
module attributes {stable_mosaic.version = 11 : i64} {
  func.func @_rows_kernel(%arg0: i32, %arg1: memref<16x32xf32, #tpu.memory_space<vmem>>, %arg2: memref<32x256xf32, #tpu.memory_space<vmem>>, %arg3: memref<1x256xf32, #tpu.memory_space<vmem>>, %arg4: memref<256x128xf32, #tpu.memory_space<vmem>>, %arg5: memref<1x128xf32, #tpu.memory_space<vmem>>, %arg6: memref<128x128xf32, #tpu.memory_space<vmem>>, %arg7: memref<1x128xf32, #tpu.memory_space<vmem>>, %arg8: memref<1x1x128xf32, #tpu.memory_space<vmem>>) attributes {dimension_semantics = [#tpu.dimension_semantics<parallel>], iteration_bounds = array<i64: 2>, scalar_prefetch = 0 : i64, scratch_operands = 0 : i64, tpu.core_type = #tpu.core_type<tc>, window_params = [{transform_indices = @transform_0, window_bounds = array<i64: 16, 32>}, {pipeline_mode = #tpu.pipeline_mode<synchronous>, transform_indices = @transform_1, window_bounds = array<i64: 32, 256>}, {pipeline_mode = #tpu.pipeline_mode<synchronous>, transform_indices = @transform_2, window_bounds = array<i64: 1, 256>}, {pipeline_mode = #tpu.pipeline_mode<synchronous>, transform_indices = @transform_3, window_bounds = array<i64: 256, 128>}, {pipeline_mode = #tpu.pipeline_mode<synchronous>, transform_indices = @transform_4, window_bounds = array<i64: 1, 128>}, {pipeline_mode = #tpu.pipeline_mode<synchronous>, transform_indices = @transform_5, window_bounds = array<i64: 128, 128>}, {pipeline_mode = #tpu.pipeline_mode<synchronous>, transform_indices = @transform_6, window_bounds = array<i64: 1, 128>}, {transform_indices = @transform_7, window_bounds = array<i64: 1, 1, 128>}]} {
    %c0 = arith.constant 0 : index
    %c0_0 = arith.constant 0 : index
    %0 = vector.load %arg1[%c0, %c0_0] : memref<16x32xf32, #tpu.memory_space<vmem>>, vector<16x32xf32>
    %c0_1 = arith.constant 0 : index
    %c0_2 = arith.constant 0 : index
    %1 = vector.load %arg2[%c0_1, %c0_2] : memref<32x256xf32, #tpu.memory_space<vmem>>, vector<32x256xf32>
    %cst = arith.constant dense<0.000000e+00> : vector<16x256xf32>
    %2 = tpu.matmul %0, %1, %cst {dimension_numbers = #tpu.dot_dimension_numbers<[1], [0], [0], [1], [0, 0, 1, 1], [], []>} : vector<16x32xf32>, vector<32x256xf32>, vector<16x256xf32> -> vector<16x256xf32>
    %c0_3 = arith.constant 0 : index
    %c0_4 = arith.constant 0 : index
    %3 = vector.load %arg3[%c0_3, %c0_4] : memref<1x256xf32, #tpu.memory_space<vmem>>, vector<1x256xf32>
    %4 = vector.broadcast %3 : vector<1x256xf32> to vector<16x256xf32>
    %5 = arith.addf %2, %4 : vector<16x256xf32>
    %cst_5 = arith.constant 0.000000e+00 : f32
    %6 = vector.broadcast %cst_5 : f32 to vector<16x256xf32>
    %7 = arith.maximumf %5, %6 : vector<16x256xf32>
    %c0_6 = arith.constant 0 : index
    %c0_7 = arith.constant 0 : index
    %8 = vector.load %arg4[%c0_6, %c0_7] : memref<256x128xf32, #tpu.memory_space<vmem>>, vector<256x128xf32>
    %cst_8 = arith.constant dense<0.000000e+00> : vector<16x128xf32>
    %9 = tpu.matmul %7, %8, %cst_8 {dimension_numbers = #tpu.dot_dimension_numbers<[1], [0], [0], [1], [0, 0, 1, 1], [], []>} : vector<16x256xf32>, vector<256x128xf32>, vector<16x128xf32> -> vector<16x128xf32>
    %c0_9 = arith.constant 0 : index
    %c0_10 = arith.constant 0 : index
    %10 = vector.load %arg5[%c0_9, %c0_10] : memref<1x128xf32, #tpu.memory_space<vmem>>, vector<1x128xf32>
    %11 = vector.broadcast %10 : vector<1x128xf32> to vector<16x128xf32>
    %12 = arith.addf %9, %11 : vector<16x128xf32>
    %cst_11 = arith.constant 0.000000e+00 : f32
    %13 = vector.broadcast %cst_11 : f32 to vector<16x128xf32>
    %14 = arith.maximumf %12, %13 : vector<16x128xf32>
    %15 = vector.shape_cast %14 : vector<16x128xf32> to vector<1x16x128xf32>
    %cst_12 = arith.constant dense<0xFF800000> : vector<1x128xf32>
    %16 = vector.multi_reduction <maximumf>, %15, %cst_12 [1] : vector<1x16x128xf32> to vector<1x128xf32>
    %c0_13 = arith.constant 0 : index
    %c0_14 = arith.constant 0 : index
    %17 = vector.load %arg6[%c0_13, %c0_14] : memref<128x128xf32, #tpu.memory_space<vmem>>, vector<128x128xf32>
    %cst_15 = arith.constant dense<0.000000e+00> : vector<1x128xf32>
    %18 = tpu.matmul %16, %17, %cst_15 {dimension_numbers = #tpu.dot_dimension_numbers<[1], [0], [0], [1], [0, 0, 1, 1], [], []>} : vector<1x128xf32>, vector<128x128xf32>, vector<1x128xf32> -> vector<1x128xf32>
    %c0_16 = arith.constant 0 : index
    %c0_17 = arith.constant 0 : index
    %19 = vector.load %arg7[%c0_16, %c0_17] : memref<1x128xf32, #tpu.memory_space<vmem>>, vector<1x128xf32>
    %20 = arith.addf %18, %19 : vector<1x128xf32>
    %c0_18 = arith.constant 0 : index
    %c0_19 = arith.constant 0 : index
    %c0_20 = arith.constant 0 : index
    %21 = vector.load %arg8[%c0_18, %c0_19, %c0_20] : memref<1x1x128xf32, #tpu.memory_space<vmem>>, vector<1x1x128xf32>
    %22 = vector.shape_cast %21 : vector<1x1x128xf32> to vector<1x128xf32>
    %23 = vector.shape_cast %20 : vector<1x128xf32> to vector<1x1x128xf32>
    tpu.vector_store %arg8[%c0_18, %c0_19, %c0_20], %23 {strides = array<i32>} : memref<1x1x128xf32, #tpu.memory_space<vmem>>, vector<1x1x128xf32>,
    return
  }
  func.func @transform_0(%arg0: i32) -> (i32, i32) {
    %c0_i32 = arith.constant 0 : i32
    %c0_i32_0 = arith.constant 0 : i32
    return %arg0, %c0_i32 : i32, i32
  }
  func.func @transform_1(%arg0: i32) -> (i32, i32) {
    %c0_i32 = arith.constant 0 : i32
    %c0_i32_0 = arith.constant 0 : i32
    %c0_i32_1 = arith.constant 0 : i32
    return %c0_i32, %c0_i32_0 : i32, i32
  }
  func.func @transform_2(%arg0: i32) -> (i32, i32) {
    %c0_i32 = arith.constant 0 : i32
    %c0_i32_0 = arith.constant 0 : i32
    %c0_i32_1 = arith.constant 0 : i32
    return %c0_i32, %c0_i32_0 : i32, i32
  }
  func.func @transform_3(%arg0: i32) -> (i32, i32) {
    %c0_i32 = arith.constant 0 : i32
    %c0_i32_0 = arith.constant 0 : i32
    %c0_i32_1 = arith.constant 0 : i32
    return %c0_i32, %c0_i32_0 : i32, i32
  }
  func.func @transform_4(%arg0: i32) -> (i32, i32) {
    %c0_i32 = arith.constant 0 : i32
    %c0_i32_0 = arith.constant 0 : i32
    %c0_i32_1 = arith.constant 0 : i32
    return %c0_i32, %c0_i32_0 : i32, i32
  }
  func.func @transform_5(%arg0: i32) -> (i32, i32) {
    %c0_i32 = arith.constant 0 : i32
    %c0_i32_0 = arith.constant 0 : i32
    %c0_i32_1 = arith.constant 0 : i32
    return %c0_i32, %c0_i32_0 : i32, i32
  }
  func.func @transform_6(%arg0: i32) -> (i32, i32) {
    %c0_i32 = arith.constant 0 : i32
    %c0_i32_0 = arith.constant 0 : i32
    %c0_i32_1 = arith.constant 0 : i32
    return %c0_i32, %c0_i32_0 : i32, i32
  }
  func.func @transform_7(%arg0: i32) -> (i32, i32, i32) {
    %c0_i32 = arith.constant 0 : i32
    %c0_i32_0 = arith.constant 0 : i32
    %c0_i32_1 = arith.constant 0 : i32
    return %arg0, %c0_i32, %c0_i32_0 : i32, i32, i32
  }
}

</mosaic_0001>

<bundles_post_ra>
// kernel: tpu_custom_call.1
= control target key start
LH: loop header
LB: loop body
LE: loop exit
PB: predicated region body
PF: predicated region fallthrough
CT: control target
= control target key end

     0   :  { %s1553_s0 = inlined_call_operand.hbm [shape: f32[32,32], index: 0, kind: input, shape index: {}]   ;;  %s1554_s1 = inlined_call_operand.hbm [shape: f32[32,256], index: 1, kind: input, shape index: {}]   ;;  %s1555_s2 = inlined_call_operand.vmem [shape: f32[1,256], index: 2, kind: input, shape index: {}]   ;;  %s1556_s3 = inlined_call_operand.hbm [shape: f32[256,128], index: 3, kind: input, shape index: {}]   ;;  %s1557_s4 = inlined_call_operand.vmem [shape: f32[1,128], index: 4, kind: input, shape index: {}]   ;;  %s1558_s5 = inlined_call_operand.hbm [shape: f32[128,128], index: 5, kind: input, shape index: {}]   ;;  %s1559_s6 = inlined_call_operand.vmem [shape: f32[1,128], index: 6, kind: input, shape index: {}]   ;;  %s1560_s7 = inlined_call_operand.hbm [shape: f32[2,1,128], index: 7, kind: output, shape index: {}]  }
   0x1   :  { %1565 = sst [smem:[#allocation16_spill]] %s1554_s1 }
   0x2   :  { %12 = vsyncpa [#allocation3], 0 }
   0x3   :  { %14 = vsyncpa [#allocation3 + $0x1], 0 }
   0x4   :  { %15 = vsyncpa [#allocation6], 0 }
   0x5   :  { %16 = vsyncpa [#allocation9], 0 }
   0x6   :  { %17 = vsyncpa [#allocation4], 0 }
   0x7   :  { %19 = vsyncpa [#allocation4 + $0x1], 0  ;;  %s1271_s24 = smov 0   ;;  %s1273_s25 = smov 0  }
   0x8   :  { %s1275_s26 = smov 0   ;;  %s1277_s27 = smov 0  }
   0x9 LB: > { %s1292_s28 = sadd.s32 4294967295, %s1217_s27   ;;  %s770_s29 = sadd.s32 4294967294, %s1217_s27   ;;  %s1217_s27 = sphi %s1277_s27, %s1588_s27   ;;  %s1213_s26 = sphi %s1275_s26, %s1587_s26   ;;  %s1209_s25 = sphi %s1273_s25, %s1586_s25   ;;  %s1205_s24 = sphi %s1271_s24, %s1585_s24  }
   0xa   : > { %p45_p0 = scmp.ne.s32.totalorder %s1209_s25, %s1205_s24  ;;  %p1561_p1 = scmp.eq.s32.totalorder %s1292_s28, 0 }
   0xb   : > { %p201_p3 = scmp.eq.s32.totalorder %s770_s29, 1  ;;  %p771_p5 = scmp.ge.s32.totalorder %s1217_s27, 1 }
   0xc   : > { %p1301_p4 = por %p1561_p1, %p45_p0  ;;  %p208_p7 = scmp.lt.s32.totalorder %s1217_s27, 3 }
   0xd   : > { %p1306_p6 = por %p201_p3, %p45_p0  ;;  %s1219_s10 = smov [#allocation5]  }
   0xe   : > { %s1566_s30 = scalar_select %p1301_p4, 1, 0 }
   0xf   : > { %s1567_s8 = scalar_select %p1306_p6, 1, 0 }
  0x10   : > { %p1311_p8 = pnand %p771_p5, %p208_p7  ;;  %s220_s11 = sshll.u32 %s1219_s10, 4  ;;  %s1315_s11 = int_to_ptr.vmem [resolvable:$true] %s220_s11 }
  0x11   : > { %1568 = sst [smem:[#allocation15_spill]] %s1567_s8  ;;  %s1220_s13 = smov [#allocation7]  }
  0x12   : > { %s1569_s9 = scalar_select %p1311_p8, 1, 0 }
  0x13   : > { %p961_p9 = pneg %p1311_p8  ;;  %s236_s14 = sshll.u32 %s1220_s13, 4  ;;  %s1326_s14 = int_to_ptr.vmem [resolvable:$true] %s236_s14 }
  0x14   : > { %s1571_s1 = sld [smem:[#allocation16_spill]] }
  0x15   : > { %p1322_p11 = pnand %p961_p9, %p1561_p1 }
  0x17   : > { %p1336_p13 = pneg %p1322_p11 }
  0x1a   : > { %s1029_s17 = scalar_lea.hbm %s1571_s1, 1024 }
  0x1b   : > { %p1030_p12 = scmp.ne.s32.totalorder %s1571_s1, %s1029_s17  ;;  %p1036_p5 = scmp.lt.u32.totalorder %s1029_s17, %s1571_s1 }
  0x1d   : > { %p1032_p0 = pnand %p1336_p13, %p1030_p12 }
  0x1f   : > { %p1033_p3 = pneg %p1032_p0 }
  0x21   : > { %p1038_p7 = pnand %p1036_p5, %p1033_p3 }
  0x23   : > { %1041 = shalt.err (!%p1038_p7)
}
  0x24   : > { %s1042_s23 = scalar_lea.vmem %s1315_s11, 1024  ;;  %p1050_p2 = scmp.lt.s32.totalorder %s1315_s11, %s1315_s11 }
  0x25   : > { %p1043_p9 = scmp.ne.s32.totalorder %s1315_s11, %s1042_s23  ;;  %p1051_p6 = scmp.lt.s32.totalorder %s1042_s23, %s1042_s23 }
  0x27   : > { %p1045_p10 = pnand %p1043_p9, %p1336_p13  ;;  %p1052_p12 = por %p1051_p6, %p1050_p2 }
  0x29   : > { %p1046_p1 = pneg %p1045_p10 }
  0x2b   : > { %p1053_p0 = pnand %p1052_p12, %p1046_p1 }
  0x2d   : > { %1056 = shalt.err (!%p1053_p0)
}
  0x2e   : > { %s1221_s29 = smov 256   ;;  %s1222_s10 = smov 16  }
  0x2f   : > { %964 = dma.hbm_to_vmem [thread:$0]  (!%p1322_p11), %s1571_s1, 1024, %s1315_s11, [#allocation6], %s1221_s29, %s1221_s29, %s1222_s10  }
  0x30   : > { %s1057_s18 = scalar_lea.hbm %s1556_s3, 4096 }
  0x31   : > { %p1058_p2 = scmp.ne.s32.totalorder %s1556_s3, %s1057_s18  ;;  %p1064_p10 = scmp.lt.u32.totalorder %s1057_s18, %s1556_s3 }
  0x33   : > { %p1060_p1 = pnand %p1058_p2, %p1336_p13 }
  0x35   : > { %p1061_p6 = pneg %p1060_p1 }
  0x37   : > { %p1066_p3 = pnand %p1064_p10, %p1061_p6 }
  0x39   : > { %1069 = shalt.err (!%p1066_p3)
}
  0x3a   : > { %s1070_s11 = scalar_lea.vmem %s1326_s14, 4096  ;;  %p1078_p12 = scmp.lt.s32.totalorder %s1326_s14, %s1326_s14 }
  0x3b   : > { %p1071_p5 = scmp.ne.s32.totalorder %s1326_s14, %s1070_s11  ;;  %p1079_p0 = scmp.lt.s32.totalorder %s1070_s11, %s1070_s11 }
  0x3d   : > { %p1073_p7 = pnand %p1071_p5, %p1336_p13  ;;  %p1080_p2 = por %p1079_p0, %p1078_p12 }
  0x3f   : > { %p1074_p9 = pneg %p1073_p7 }
  0x41   : > { %p1081_p1 = pnand %p1080_p2, %p1074_p9 }
  0x43   : > { %1084 = shalt.err (!%p1081_p1)
}
  0x44   : > { %s1223_s29 = smov 128   ;;  %s1224_s10 = smov 8  }
  0x45   : > { %967 = dma.hbm_to_vmem [thread:$0]  (!%p1322_p11), %s1556_s3, 4096, %s1326_s14, [#allocation6], %s1223_s29, %s1223_s29, %s1224_s10  }
  0x46   : > { %s1225_s16 = smov [#allocation8]   ;;  %s1384_s18 = sadd.s32 1, %s1217_s27  }
  0x47   : > { %s252_s17 = sshll.u32 %s1225_s16, 4  ;;  %s1085_s22 = scalar_lea.hbm %s1558_s5, 2048  ;;  %s253_s17 = int_to_ptr.vmem [resolvable:$true] %s252_s17 }
  0x48   : > { %p1086_p6 = scmp.ne.s32.totalorder %s1558_s5, %s1085_s22  ;;  %p1092_p5 = scmp.lt.u32.totalorder %s1085_s22, %s1558_s5 }
  0x4a   : > { %p1088_p10 = pnand %p1086_p6, %p1336_p13 }
  0x4c   : > { %p1089_p3 = pneg %p1088_p10 }
  0x4e   : > { %p1094_p7 = pnand %p1092_p5, %p1089_p3 }
  0x50   : > { %1097 = shalt.err (!%p1094_p7)
}
  0x51   : > { %s1098_s14 = scalar_lea.vmem %s253_s17, 2048  ;;  %p1106_p2 = scmp.lt.s32.totalorder %s253_s17, %s253_s17 }
  0x52   : > { %p1099_p9 = scmp.ne.s32.totalorder %s253_s17, %s1098_s14  ;;  %p1107_p1 = scmp.lt.s32.totalorder %s1098_s14, %s1098_s14 }
  0x54   : > { %p1101_p12 = pnand %p1099_p9, %p1336_p13  ;;  %p1108_p4 = por %p1107_p1, %p1106_p2 }
  0x56   : > { %p1102_p0 = pneg %p1101_p12 }
  0x58   : > { %p1109_p8 = pnand %p1108_p4, %p1102_p0 }
  0x5a   : > { %1112 = shalt.err (!%p1109_p8)
}
  0x5b   : > { %970 = dma.hbm_to_vmem [thread:$0]  (!%p1322_p11), %s1558_s5, 2048, %s253_s17, [#allocation9], %s1223_s29, %s1223_s29, %s1224_s10  }
  0x5c   : > { %s29_s20 = ssub.s32 %s1217_s27, %s1384_s18  ;;  %s32_s12 = sadd.s32 1, %s1213_s26 }
  0x5d   : > { %p30_p4 = scmp.eq.s32.totalorder %s29_s20, 0  ;;  %p39_p8 = scmp.ne.s32.totalorder %s1213_s26, %s1209_s25 }
  0x5e   : > { %p40_p13 = scmp.eq.s32.totalorder %s1217_s27, 0  ;;  %p982_p6 = scmp.lt.s32.totalorder %s1217_s27, 2 }
  0x5f   : > { %s1415_s13 = scalar_select %p30_p4, %s1213_s26, %s32_s12  }
  0x60   : > { %p41_p10 = por %p40_p13, %p39_p8  ;;  %p1573_p3 = scmp.eq.s32.totalorder %s1292_s28, 1 }
  0x61   : > { %s269_s16 = sand.u32 1, %s1213_s26   ;;  %s790_s19 = sshll.u32 %s1217_s27, 8 }
  0x62   : > { %p1419_p5 = por %p1573_p3, %p39_p8  ;;  %s776_s21 = sshll.u32 %s269_s16, 4 }
  0x63   : > { %s1428_s17 = scalar_lea.hbm %s1553_s0, %s790_s19  ;;  %s273_s11 = scalar_lea.vmem [#allocation2], %s776_s21 }
  0x64   : > { %s280_s14 = sshll.u32 %s273_s11, 4  ;;  %p1430_p11 = pnand %p982_p6, %p41_p10  ;;  %s1434_s14 = int_to_ptr.vmem [resolvable:$true] %s280_s14 }
  0x65   : > { %s1436_s8 = scalar_lea.sflag [#allocation3], %s269_s16  ;;  %s1113_s20 = scalar_lea.hbm %s1428_s17, 256 }
  0x66   : > { %p1114_p7 = scmp.ne.s32.totalorder %s1428_s17, %s1113_s20  ;;  %p1115_p9 = pneg %p1430_p11 }
  0x67   : > { %s1118_s21 = scalar_lea.hbm %s1553_s0, 512  ;;  %p1119_p2 = scmp.lt.u32.totalorder %s1428_s17, %s1553_s0 }
  0x68   : > { %p1116_p12 = pnand %p1115_p9, %p1114_p7  ;;  %p1120_p1 = scmp.lt.u32.totalorder %s1118_s21, %s1113_s20 }
  0x69   : > { %p1122_p8 = scmp.lt.u32.totalorder %s1113_s20, %s1428_s17 }
  0x6a   : > { %p1117_p0 = pneg %p1116_p12  ;;  %p1121_p4 = por %p1120_p1, %p1119_p2 }
  0x6c   : > { %p1123_p13 = por %p1122_p8, %p1121_p4 }
  0x6e   : > { %p1124_p6 = pnand %p1123_p13, %p1117_p0 }
  0x70   : > { %1127 = shalt.err (!%p1124_p6)
}
  0x71   : > { %s1128_s16 = scalar_lea.vmem %s1434_s14, 256  ;;  %s1226_s11 = smov [#allocation2]  }
  0x72   : > { %p1129_p10 = scmp.ne.s32.totalorder %s1434_s14, %s1128_s16  ;;  %s1133_s12 = sshll.u32 %s1226_s11, 4  ;;  %s1134_s12 = int_to_ptr.vmem [resolvable:$false] %s1133_s12 }
  0x73   : > { %s1135_s19 = scalar_lea.vmem %s1134_s12, 512  ;;  %p1136_p12 = scmp.lt.s32.totalorder %s1434_s14, %s1134_s12 }
  0x74   : > { %p1131_p3 = pnand %p1129_p10, %p1115_p9  ;;  %p1137_p2 = scmp.lt.s32.totalorder %s1135_s19, %s1128_s16 }
  0x76   : > { %p1132_p7 = pneg %p1131_p3  ;;  %p1138_p1 = por %p1137_p2, %p1136_p12 }
  0x78   : > { %p1139_p4 = pnand %p1138_p1, %p1132_p7 }
  0x7a   : > { %1142 = shalt.err (!%p1139_p4)
}
  0x7b   : > { %974 = dma.hbm_to_vmem [thread:$0]  (!%p1430_p11), %s1428_s17, 256, %s1434_s14, %s1436_s8, %s1223_s29, %s1223_s29, %s1224_s10  }
  0x7c   : > { %p1576_p9 = scmp.ne.s32.totalorder %s1569_s9, 0 }
  0x7d   : > { %s1470_s20 = sand.u32 (!%p1576_p9), 1, %s1209_s25   ;;  %p1577_p0 = scmp.ne.s32.totalorder (!%p1576_p9), %s1566_s30, 0 }
  0x7e   : > { %292 = sbr.rel (%p1576_p9) target bundleno = 835 (0x343), region = 48  ;;  %s780_s21 = sshll.u32 (!%p1576_p9), %s1470_s20, 4 }
  0x7f   : > { %s295_s22 = scalar_lea.sflag (!%p1576_p9), [#allocation3], %s1470_s20  ;;  %s1474_s23 = scalar_lea.vmem (!%p1576_p9), [#allocation2], %s780_s21 }
  0x85   : > { %1188 = dma.done.wait (%p1577_p0), %s295_s22, 256  }
  0x86   : > { %1190 = vsyncadd (%p1577_p0), %s295_s22, 4294967040  ;;  %p1578_p11 = scmp.eq.s32.totalorder %s1292_s28, 0 }
  0x88   : > { %1192 = dma.done.wait (%p1578_p11), [#allocation6], 5120   ;;  %p1579_p8 = pmov %p1578_p11 }
  0x8a   : > { %1194 = vsyncadd (%p1579_p8), [#allocation6], 4294962176  ;;  %p1580_p13 = pmov %p1579_p8 }
  0x8b   : > { %p1581_p6 = pmov %p1579_p8 }
  0x8c   : > { %1196 = dma.done.wait (%p1580_p13), [#allocation9], 2048  }
  0x8d   : > { %1198 = vsyncadd (%p1581_p6), [#allocation9], 4294965248  ;;  %v1227_v0 = vmov 0.0   ;;  %v344_v1 = vld [vmem:[#allocation5 + $0x8] sm:$0xff]  ;;  %v346_v2 = vld [vmem:[#allocation5 + $0x18] sm:$0xff]  ;;  %vm363_vm0 = vcmask 261120  }
  0x8e   : > { %434 = vmatprep.mubr.f32.mxu0 %v1227_v0  ;;  %v343_v3 = vld [vmem:[#allocation5] sm:$0xff]  ;;  %v881_v4 = vpack.c.bf16 %v346_v2, %v344_v1  ;;  %v345_v5 = vld [vmem:[#allocation5 + $0x10] sm:$0xff]  ;;  %v348_v6 = vld [vmem:[#allocation5 + $0x28] sm:$0xff]  ;;  %vm1229_vm1 = vmmov 0   ;;  %s787_s1 = sshll.u32 %s1292_s28, 4  ;;  %s339_s8 = scalar_lea.vmem [#allocation10], %s1470_s20 }
  0x8f   : > { %v350_v7 = vld [vmem:[#allocation5 + $0x38] sm:$0xff]  ;;  %v883_v8 = vpack.c.bf16 %v345_v5, %v343_v3  ;;  %v347_v10 = vld [vmem:[#allocation5 + $0x20] sm:$0xff]  ;;  %v349_v11 = vld [vmem:[#allocation5 + $0x30] sm:$0xff]  ;;  %v1228_v3 = vmov 0.0|0.0   ;;  %s675_s16 = sshll.u32 %s339_s8, 4  ;;  %s1509_s19 = scalar_lea.hbm %s1560_s7, %s787_s1  ;;  %s1511_s16 = int_to_ptr.vmem [resolvable:$true] %s675_s16 }
  0x90   : > { %v885_v9 = vpack.c.bf16 %v350_v7, %v348_v6  ;;  %882 = vmatprep.subr.bf16.mxu0 %v881_v4  ;;  %v467_v12 = vld [vmem:[#allocation7 + $0x80] sm:$0xff]  ;;  %v468_v13 = vld [vmem:[#allocation7 + $0x88] sm:$0xff]  ;;  %v887_v14 = vpack.c.bf16 %v349_v11, %v347_v10  ;;  %v469_v18 = vld [vmem:[#allocation7 + $0x90] sm:$0xff]  ;;  %v353_v7 = vlaneseq  ;;  %s663_s21 = scalar_lea.sflag [#allocation4], %s1470_s20  ;;  %s1143_s22 = scalar_lea.vmem %s1511_s16, 16 }
  0x91   : > { %884 = vmatpush1.bf16.msra.mxu0 %v883_v8  ;;  %v889_v15 = vpack.c.bf16 %v468_v13, %v467_v12  ;;  %v451_v16 = vld [vmem:[#allocation7] sm:$0xff]  ;;  %v452_v17 = vld [vmem:[#allocation7 + $0x8] sm:$0xff]  ;;  %v470_v20 = vld [vmem:[#allocation7 + $0x98] sm:$0xff]  ;;  %p1144_p10 = scmp.ne.s32.totalorder %s1511_s16, %s1143_s22  ;;  %s1230_s28 = smov [#allocation10]  }
  0x92   : > { %886 = vmatprep.subr.bf16.mxu0 %v885_v9  ;;  %v891_v19 = vpack.c.bf16 %v452_v17, %v451_v16  ;;  %v453_v21 = vld [vmem:[#allocation7 + $0x10] sm:$0xff]  ;;  %v454_v22 = vld [vmem:[#allocation7 + $0x18] sm:$0xff]  ;;  %v893_v23 = vpack.c.bf16 %v470_v20, %v469_v18  ;;  %v471_v24 = vld [vmem:[#allocation7 + $0xa0] sm:$0xff]  ;;  %v354_v8 = vshrl.u32 %v353_v7, 7 }
  0x93   : > { %890 = vmatprep.subr.bf16.mxu1 %v889_v15  ;;  %v472_v25 = vld [vmem:[#allocation7 + $0xa8] sm:$0xff]  ;;  %v895_v26 = vpack.c.bf16 %v454_v22, %v453_v21  ;;  %v341_v27 = vld [vmem:[%s1474_s23] sm:$0xff]  ;;  %v474_v32 = vld [vmem:[#allocation7 + $0xb8] sm:$0xff]  ;;  %p1145_p3 = pnand %p1144_p10, %p1419_p5 }
  0x94   : > { %892 = vmatpush3.bf16.msra.mxu1 %v891_v19  ;;  %v897_v28 = vpack.c.bf16 %v472_v25, %v471_v24  ;;  %v455_v29 = vld [vmem:[#allocation7 + $0x20] sm:$0xff]  ;;  %v456_v30 = vld [vmem:[#allocation7 + $0x28] sm:$0xff]  ;;  %v473_v31 = vld [vmem:[#allocation7 + $0xb0] sm:$0xff]  ;;  %v355_v9 = vsub.s32 0, %v354_v8  ;;  %v359_v11 = vsub.s32 1, %v354_v8 }
  0x95   : > { %888 = vmatpush1.bf16.msra.mxu0 %v887_v14  ;;  %894 = vmatprep.subr.bf16.mxu1 %v893_v23  ;;  %v899_v33 = vpack.c.bf16 %v456_v30, %v455_v29  ;;  %v342_v34 = vld [vmem:[%s1474_s23 + $0x8] sm:$0xff]  ;;  %v901_v35 = vpack.c.bf16 %v474_v32, %v473_v31  ;;  %v457_v36 = vld [vmem:[#allocation7 + $0x30] sm:$0xff]  ;;  %v475_v38 = vld [vmem:[#allocation7 + $0xc0] sm:$0xff]  ;;  %p1146_p7 = pneg %p1145_p3  ;;  %s1147_s23 = sshll.u32 %s1230_s28, 4  ;;  %s1148_s23 = int_to_ptr.vmem [resolvable:$false] %s1147_s23 }
  0x96   : > { %v458_v37 = vld [vmem:[#allocation7 + $0x38] sm:$0xff]  ;;  %v476_v39 = vld [vmem:[#allocation7 + $0xc8] sm:$0xff]  ;;  %v459_v42 = vld [vmem:[#allocation7 + $0x40] sm:$0xff]  ;;  %921 = vmatprep.subr.bf16.mxu0 %v1228_v3  ;;  %s1149_s30 = scalar_lea.vmem %s1148_s23, 32  ;;  %p1150_p12 = scmp.lt.s32.totalorder %s1511_s16, %s1148_s23 }
  0x97   : > { %v903_v40 = vpack.c.bf16 %v458_v37, %v457_v36  ;;  %v905_v41 = vpack.c.bf16 %v476_v39, %v475_v38  ;;  %v460_v43 = vld [vmem:[#allocation7 + $0x48] sm:$0xff]  ;;  %v477_v44 = vld [vmem:[#allocation7 + $0xd0] sm:$0xff]  ;;  %v478_v45 = vld [vmem:[#allocation7 + $0xd8] sm:$0xff]  ;;  %p1151_p2 = scmp.lt.s32.totalorder %s1149_s30, %s1143_s22 }
  0x98   : > { %784 = vmatmul.mubr.msk.f32.vlgmr.msra.gmra.mrb[0].mxu0 %vm363_vm0, %v341_v27  ;;  %896 = vmatpush3.bf16.msra.mxu1 %v895_v26  ;;  %v907_v46 = vpack.c.bf16 %v460_v43, %v459_v42  ;;  %v909_v47 = vpack.c.bf16 %v478_v45, %v477_v44  ;;  %v461_v48 = vld [vmem:[#allocation7 + $0x50] sm:$0xff]  ;;  %v462_v49 = vld [vmem:[#allocation7 + $0x58] sm:$0xff]  ;;  %v479_v50 = vld [vmem:[#allocation7 + $0xe0] sm:$0xff] }
  0x99   : > { %440 = vmatprep.mubr.f32.mxu0 %v1227_v0  ;;  %898 = vmatprep.subr.bf16.mxu1 %v897_v28  ;;  %v480_v51 = vld [vmem:[#allocation7 + $0xe8] sm:$0xff]  ;;  %v911_v52 = vpack.c.bf16 %v462_v49, %v461_v48  ;;  %v463_v54 = vld [vmem:[#allocation7 + $0x60] sm:$0xff]  ;;  %v481_v57 = vld [vmem:[#allocation7 + $0xf0] sm:$0xff]  ;;  %p1152_p1 = por %p1151_p2, %p1150_p12 }
  0x9a   : > { %v913_v53 = vpack.c.bf16 %v480_v51, %v479_v50  ;;  %v464_v55 = vld [vmem:[#allocation7 + $0x68] sm:$0xff]  ;;  %v482_v58 = vld [vmem:[#allocation7 + $0xf8] sm:$0xff]  ;;  %v465_v60 = vld [vmem:[#allocation7 + $0x70] sm:$0xff] }
  0x9b   : > { %v915_v56 = vpack.c.bf16 %v464_v55, %v463_v54  ;;  %v917_v59 = vpack.c.bf16 %v482_v58, %v481_v57  ;;  %v466_v61 = vld [vmem:[#allocation7 + $0x78] sm:$0xff]  ;;  %v574_v63 = vld [vmem:[#allocation8] sm:$0xff]  ;;  %v575_v1 = vld [vmem:[#allocation8 + $0x8] sm:$0xff]  ;;  %p1153_p4 = pnand %p1152_p1, %p1146_p7 }
  0x9c   : > { %785 = vmatmul.mubr.msk.f32.gmra.mrb[2].mxu0 %vm363_vm0, %v342_v34  ;;  %900 = vmatpush3.bf16.msra.mxu1 %v899_v33  ;;  %v919_v62 = vpack.c.bf16 %v466_v61, %v465_v60  ;;  %v576_v2 = vld [vmem:[#allocation8 + $0x10] sm:$0xff]  ;;  %v922_v4 = vpack.c.bf16 %v575_v1, %v574_v63  ;;  %v577_v5 = vld [vmem:[#allocation8 + $0x18] sm:$0xff]  ;;  %v351_v10 = vld [vmem:[%s1555_s2] sm:$0x3] }
  0x9d   : > { %902 = vmatprep.subr.bf16.mxu1 %v901_v35  ;;  %v925_v6 = vpack.c.bf16 %v577_v5, %v576_v2  ;;  %v356_v12 = vrot.slane %v351_v10, %v355_v9  ;;  %v360_v13 = vrot.slane %v351_v10, %v359_v11  ;;  %v578_v26 = vld [vmem:[#allocation8 + $0x20] sm:$0xff]  ;;  %v579_v27 = vld [vmem:[#allocation8 + $0x28] sm:$0xff]  ;;  %v580_v29 = vld [vmem:[#allocation8 + $0x30] sm:$0xff]  ;;  %878 = vmatprep.mubr.msk.f32.mxu0 %vm1229_vm1, %v1227_v0 }
  0x9e   : > { %923 = vmatpush3.bf16.msra.mxu0 %v922_v4  ;;  %v928_v28 = vpack.c.bf16 %v579_v27, %v578_v26  ;;  %v581_v30 = vld [vmem:[#allocation8 + $0x38] sm:$0xff]  ;;  %v582_v32 = vld [vmem:[#allocation8 + $0x40] sm:$0xff]  ;;  %v583_v33 = vld [vmem:[#allocation8 + $0x48] sm:$0xff] }
  0x9f   : > { %924 = vmatprep.subr.bf16.mxu0 %v1228_v3  ;;  %v931_v31 = vpack.c.bf16 %v581_v30, %v580_v29  ;;  %v934_v34 = vpack.c.bf16 %v583_v33, %v582_v32  ;;  %v584_v35 = vld [vmem:[#allocation8 + $0x50] sm:$0xff]  ;;  %v585_v36 = vld [vmem:[#allocation8 + $0x58] sm:$0xff]  ;;  %v586_v38 = vld [vmem:[#allocation8 + $0x60] sm:$0xff] }
  0xa0   : > { %904 = vmatpush3.bf16.msra.mxu1 %v903_v40  ;;  %v937_v37 = vpack.c.bf16 %v585_v36, %v584_v35  ;;  %v587_v39 = vld [vmem:[#allocation8 + $0x68] sm:$0xff]  ;;  %v589_v42 = vld [vmem:[#allocation8 + $0x78] sm:$0xff]  ;;  %v590_v61 = vld [vmem:[%s1559_s6] sm:$0x1] }
  0xa1   : > { %906 = vmatprep.subr.bf16.mxu1 %v905_v41  ;;  %v940_v40 = vpack.c.bf16 %v587_v39, %v586_v38  ;;  %v588_v41 = vld [vmem:[#allocation8 + $0x70] sm:$0xff] }
  0xa2   : > { %926 = vmatpush3.bf16.msra.mxu0 %v925_v6  ;;  %v943_v43 = vpack.c.bf16 %v589_v42, %v588_v41 }
  0xa3   : > { %927 = vmatprep.subr.bf16.mxu0 %v1228_v3 }
  0xa4   : > { %908 = vmatpush3.bf16.msra.mxu1 %v907_v46 }
  0xa5   : > { %910 = vmatprep.subr.bf16.mxu1 %v909_v47  ;;  %v786_v47 = vld [vmem:[%s1557_s4] ss:$0 sm:$0xff] }
  0xa6   : > { %929 = vmatpush3.bf16.msra.mxu0 %v928_v28 }
  0xa7   : > { %930 = vmatprep.subr.bf16.mxu0 %v1228_v3 }
  0xa8   : > { %912 = vmatpush3.bf16.msra.mxu1 %v911_v52 }
  0xa9   : > { %914 = vmatprep.subr.bf16.mxu1 %v913_v53 }
  0xaa   : > { %932 = vmatpush3.bf16.msra.mxu0 %v931_v31 }
  0xab   : > { %933 = vmatprep.subr.bf16.mxu0 %v1228_v3 }
  0xac   : > { %916 = vmatpush3.bf16.msra.mxu1 %v915_v56 }
  0xad   : > { %918 = vmatprep.subr.bf16.mxu1 %v917_v59 }
  0xae   : > { %935 = vmatpush3.bf16.msra.mxu0 %v934_v34 }
  0xaf   : > { %936 = vmatprep.subr.bf16.mxu0 %v1228_v3 }
  0xb0   : > { %920 = vmatpush3.bf16.msra.mxu1 %v919_v62 }
  0xb2   : > { %938 = vmatpush3.bf16.msra.mxu0 %v937_v37 }
  0xb3   : > { %939 = vmatprep.subr.bf16.mxu0 %v1228_v3 }
  0xb6   : > { %941 = vmatpush3.bf16.msra.mxu0 %v940_v40 }
  0xb7   : > { %942 = vmatprep.subr.bf16.mxu0 %v1228_v3 }
  0xba   : > { %944 = vmatpush3.bf16.msra.mxu0 %v943_v43 }
 0x16b   : > { %v436_v14 = vpop.f32.mrb[0].mxu0 }
 0x16c   : > { %v437_v15 = vadd.f32 %v436_v14, %v356_v12  ;;  %v438_v16 = vpop.f32.mrb[1].mxu0 }
 0x16d   : > { %v439_v17 = vadd.f32 %v438_v16, %v360_v13 }
 0x16e   : > { %v447_v20 = vmax.f32 %v437_v15, 0.0 }
 0x16f   : > { %v442_v18 = vpop.f32.mrb[2].mxu0  ;;  %v448_v19 = vmax.f32 %v439_v17, 0.0 }
 0x170   : > { %v443_v21 = vadd.f32 %v442_v18, %v356_v12  ;;  %v444_v22 = vpop.f32.mrb[3].mxu0 }
 0x171   : > { %v445_v23 = vadd.f32 %v444_v22, %v360_v13  ;;  %554 = vmatprep.mubr.f32.mxu1 %v448_v19 }
 0x172   : > { %555 = vmatmul.mubr.f32.vlgmr.msra.gmra.mrb[0].mxu1 %v447_v20  ;;  %v449_v25 = vmax.f32 %v443_v21, 0.0 }
 0x173   : > { %v450_v24 = vmax.f32 %v445_v23, 0.0 }
 0x175   : > { %559 = vmatprep.mubr.f32.mxu1 %v450_v24 }
 0x176   : > { %560 = vmatmul.mubr.f32.gmra.mrb[2].mxu1 %v449_v25 }
 0x245   : > { %v823_v44 = vpop.f32.mrb[0].mxu1 }
 0x246   : > { %v824_v45 = vpop.f32.mrb[1].mxu1 }
 0x247   : > { %v825_v46 = vadd.f32 %v824_v45, %v823_v44 }
 0x249   : > { %v826_v48 = vpop.f32.mrb[2].mxu1  ;;  %v557_v50 = vadd.f32 %v825_v46, %v786_v47 }
 0x24a   : > { %v827_v49 = vpop.f32.mrb[3].mxu1 }
 0x24b   : > { %v828_v51 = vadd.f32 %v827_v49, %v826_v48  ;;  %v565_v53 = vmax.f32 %v557_v50, 0.0 }
 0x24d   : > { %v562_v52 = vadd.f32 %v828_v51, %v786_v47 }
 0x24f   : > { %v566_v54 = vmax.f32 %v562_v52, 0.0 }
 0x251   : > { %v567_v55 = vmax.f32 %v565_v53, %v566_v54 }
 0x253   : > { %v568_v56 = vrot.slane %v567_v55, 4 }
 0x255   : > { %v569_v57 = vmax.f32 %v567_v55, %v568_v56 }
 0x257   : > { %v570_v0 = vrot.slane %v569_v57, 2 }
 0x259   : > { %v571_v58 = vmax.f32 %v569_v57, %v570_v0 }
 0x25b   : > { %v572_v59 = vrot.slane %v571_v58, 1 }
 0x25d   : > { %v573_v60 = vmax.f32 %v571_v58, %v572_v59 }
 0x25f   : > { %879 = vmatmul.mubr.f32.vlgmr.msra.gmra.mrb[4].mxu0 %v573_v60 }
 0x332   : > { %v657_v62 = vpop.f32.mrb[4].mxu0 }
 0x333   : > { %v658_v63 = vadd.f32 %v657_v62, %v590_v61  ;;  %v880_v1 = vpop.f32.mrb[5].mxu0 }
 0x335   : > { %661 = vst [vmem:[%s339_s8] sm:$0x1] %v658_v63 }
 0x336   : > { %1156 = shalt.err (!%p1153_p4)
}
 0x337   : > { %s1157_s20 = scalar_lea.hbm %s1509_s19, 16  ;;  %s1161_s10 = scalar_lea.hbm %s1560_s7, 32 }
 0x338   : > { %p1158_p9 = scmp.ne.s32.totalorder %s1509_s19, %s1157_s20  ;;  %p1162_p8 = scmp.lt.u32.totalorder %s1509_s19, %s1560_s7 }
 0x339   : > { %p1163_p13 = scmp.lt.u32.totalorder %s1161_s10, %s1157_s20  ;;  %p1165_p10 = scmp.lt.u32.totalorder %s1157_s20, %s1509_s19 }
 0x33a   : > { %p1159_p0 = pnand %p1158_p9, %p1419_p5 }
 0x33b   : > { %p1164_p6 = por %p1163_p13, %p1162_p8 }
 0x33c   : > { %p1160_p11 = pneg %p1159_p0 }
 0x33d   : > { %p1166_p3 = por %p1165_p10, %p1164_p6 }
 0x33f   : > { %p1167_p7 = pnand %p1166_p3, %p1160_p11 }
 0x341   : > { %1170 = shalt.err (!%p1167_p7)
}
 0x342   : > { %959 = dma.vmem_to_hbm [thread:$0]  (%p1419_p5), %s1511_s16, 16, %s1509_s19, %s663_s21  }
 0x343 PF: > { %s1582_s1 = sld [smem:[#allocation15_spill]]  ;;  %s687_s8 = sand.u32 1, %s1205_s24  }
 0x344   : > { %p1584_p2 = scmp.ge.s32.totalorder %s1217_s27, 2  ;;  %s688_s11 = scalar_lea.sflag [#allocation4], %s687_s8 }
 0x349   : > { %p1583_p12 = scmp.ne.s32.totalorder %s1582_s1, 0 }
 0x34b   : > { %p976_p1 = pnand %p1584_p2, %p1583_p12 }
 0x34d   : > { %1200 = dma.done.wait (!%p976_p1), %s688_s11, 16  }
 0x34e   : > { %1202 = vsyncadd (!%p976_p1), %s688_s11, 4294967280  ;;  %p22_p4 = scmp.ge.s32.totalorder %s1384_s18, 4   ;;  %s1585_s24 = smov %s1209_s25 }
 0x34f   : > { %s1586_s25 = smov %s1213_s26  ;;  %s1587_s26 = smov %s1415_s13 }
 0x350   : > { %s1588_s27 = smov %s1384_s18  ;;  %24 = sbr.rel (!%p22_p4) target bundleno = 9 (0x9), region = 105 }
 0x357   :  { %692 = vsyncpa [#allocation3], 1 }
 0x358   :  { %694 = vsyncpa [#allocation3 + $0x1], 1 }
 0x359   :  { %695 = vsyncpa [#allocation6], 1 }
 0x35a   :  { %696 = vsyncpa [#allocation9], 1 }
 0x35b   :  { %697 = vsyncpa [#allocation4], 1 }
 0x35c   :  { %699 = vsyncpa [#allocation4 + $0x1], 1 }

</bundles_post_ra>
